<compile_context>
chip_gen: v7x
topology: tpu7x:2x2x1
jax: 0.10.0
libtpu: 0.0.40
codegen_flags: <defaults>
</compile_context>

<pallas_src>
import functools

import jax
import jax.numpy as jnp
from jax.experimental import pallas as pl
from jax.experimental.pallas import tpu as pltpu


_LANES = 128          # partial-sum output row width (lane-dense)
_N_PARTIALS = 7       # [a_y, a_s, b_y, b_s, sum_K, sum_LY, sum_LS]


def _gdopt_partial_kernel(k_ref, ly_ref, ls_ref, out_ref):
    """Per row-block partial reductions (VPU multiply-adds + small collapses).

    k_ref, ly_ref, ls_ref : (tm, n) blocks of K, L_Y, L_S (native dtype).
    out_ref               : (1, 128) f32 row of partial sums for this block.
    """
    K = k_ref[...].astype(jnp.float32)
    LY = ly_ref[...].astype(jnp.float32)
    LS = ls_ref[...].astype(jnp.float32)

    # Row sums over all n columns (each block spans the full column extent).
    rK = jnp.sum(K, axis=1, keepdims=True)    # (tm, 1)
    rLY = jnp.sum(LY, axis=1, keepdims=True)
    rLS = jnp.sum(LS, axis=1, keepdims=True)

    a_y = jnp.sum(K * LY)                     # sum(K o L_Y) over this block
    a_s = jnp.sum(K * LS)                     # sum(K o L_S)
    b_y = jnp.sum(rK * rLY)                   # sum_i rowsumK_i * rowsumLY_i
    b_s = jnp.sum(rK * rLS)
    s_k = jnp.sum(rK)                         # sum(K) over this block's rows
    s_ly = jnp.sum(rLY)
    s_ls = jnp.sum(rLS)

    # Pack the 7 scalars into lanes 0..6 of a (1, 128) output row.
    lane = jax.lax.broadcasted_iota(jnp.int32, (1, _LANES), 1)
    row = jnp.zeros((1, _LANES), jnp.float32)
    for idx, v in enumerate((a_y, a_s, b_y, b_s, s_k, s_ly, s_ls)):
        row = jnp.where(lane == idx, v, row)
    out_ref[...] = row


def _pick_block_rows(n, itemsize):
    """Largest row-block that (a) divides n, (b) respects dtype sublane tiling,
    (c) keeps 3 inputs x 2 pipeline buffers under ~24 MiB of VMEM."""
    min_tm = {4: 8, 2: 16, 1: 32}.get(itemsize, 8)
    budget = 24 * 1024 * 1024
    if n % min_tm != 0:
        return n                      # full-array block is always layout-legal
    if 6 * n * n * itemsize <= budget:
        return n                      # whole matrices fit; single block
    best = min_tm
    tm = min_tm
    while tm <= n:
        if n % tm == 0 and 6 * tm * n * itemsize <= budget:
            best = tm
        tm *= 2
    return best


def gdopt_forward(K, L_Y, L_S, epsilon):
    """GDOPT objective: -DEP(K, L_Y) + log-barrier(epsilon - DEP(K, L_S))."""
    n = K.shape[0]
    assert K.shape == (n, n) and L_Y.shape == (n, n) and L_S.shape == (n, n)

    itemsize = jnp.dtype(K.dtype).itemsize
    tm = _pick_block_rows(n, itemsize)
    num_blocks = n // tm if n % tm == 0 else 1
    if num_blocks == 1:
        tm = n

    in_spec = pl.BlockSpec((tm, n), lambda b: (b, 0))
    out_spec = pl.BlockSpec((1, _LANES), lambda b: (b, 0))

    pipeline_bytes = 3 * 2 * tm * n * itemsize + 2 * _LANES * 4
    cp_kwargs = dict(dimension_semantics=("parallel",))
    if pipeline_bytes > 12 * 1024 * 1024:      # may exceed v5e's 16 MiB default
        try:
            vmem_cap = pltpu.get_tpu_info().vmem_capacity_bytes
        except Exception:  # pragma: no cover - conservative fallback (v7x size)
            vmem_cap = 64 * 1024 * 1024
        cp_kwargs["vmem_limit_bytes"] = int(
            min(2 * pipeline_bytes, vmem_cap - 4 * 1024 * 1024))

    partials = pl.pallas_call(
        _gdopt_partial_kernel,
        grid=(num_blocks,),
        in_specs=[in_spec, in_spec, in_spec],
        out_specs=out_spec,
        out_shape=jax.ShapeDtypeStruct((num_blocks, _LANES), jnp.float32),
        compiler_params=pltpu.CompilerParams(**cp_kwargs),
    )(K, L_Y, L_S)

    # Tiny O(1) scalar epilogue (fused by XLA): combine block partials and
    # apply the barrier.  Keeping it outside the kernel is what allows the
    # row-block grid axis to be truly "parallel" (v7x megacore).
    p = jnp.sum(partials, axis=0, dtype=jnp.float32)
    a_y, a_s = p[0], p[1]
    b_y, b_s = p[2], p[3]
    s_k, s_ly, s_ls = p[4], p[5], p[6]

    nf = float(n)
    inv_n = 1.0 / nf
    inv_denom = 1.0 / ((nf - 1.0) ** 2)

    # sum((HKH) o L) for symmetric K, L (see module-level comment).
    sum_kc_ly = a_y - 2.0 * inv_n * b_y + inv_n * inv_n * s_k * s_ly
    sum_kc_ls = a_s - 2.0 * inv_n * b_s + inv_n * inv_n * s_k * s_ls
    dep_y = sum_kc_ly * inv_denom
    dep_s = sum_kc_ls * inv_denom

    eps = jnp.float32(epsilon)
    w = eps - dep_s
    t1 = -dep_y
    # barrier_func_log(beta=1e5, w): log(-beta*w) if w < 0 else 0.
    # Clamp so the untaken branch stays finite (clean value & gradient).
    safe_neg_w = jnp.maximum(-w, jnp.float32(1e-30))
    t6 = jnp.where(w < 0,
                   jnp.log(jnp.float32(1e5) * safe_neg_w),
                   jnp.float32(0.0))
    return t1 + t6


def reference_forward(K, H, L_Y, L_S, epsilon):
    """Pure-JAX reference of the same math (explicit-H matmul form)."""
    n = K.shape[0]
    denom = (n - 1.0) ** 2
    dep_y = jnp.trace(K @ H @ L_Y @ H) / denom
    dep_s = jnp.trace(K @ H @ L_S @ H) / denom
    w = epsilon - dep_s
    t1 = -dep_y
    t6 = jnp.where(w < 0, jnp.log(-1e5 * w), 0.0)
    return t1 + t6


if __name__ == "__main__":
    n = 32        # number of samples (kernel-matrix side)
    r = 4         # theta rows (module parameter, unused by forward)
    epsilon = 0.05

    key = jax.random.PRNGKey(0)
    k0, k1, k2, k3 = jax.random.split(key, 4)

    # nn.Parameter(theta); not used by forward() but kept for fidelity.
    theta = jax.random.uniform(k3, (r, n), dtype=jnp.float32)

    # Standard HSIC centering matrix H = I - (1/n) 11^T (the module's H).
    H = jnp.eye(n, dtype=jnp.float32) - jnp.ones((n, n), jnp.float32) / n
    # PSD kernel-style (symmetric) matrices for K, L_Y, L_S.
    Xk = jax.random.normal(k0, (n, 8), dtype=jnp.float32)
    Xy = jax.random.normal(k1, (n, 8), dtype=jnp.float32)
    Xs = jax.random.normal(k2, (n, 8), dtype=jnp.float32)
    K = Xk @ Xk.T
    L_Y = Xy @ Xy.T
    L_S = Xs @ Xs.T

    fwd = jax.jit(functools.partial(gdopt_forward, epsilon=epsilon))
    obj = fwd(K, L_Y, L_S)
    obj = jax.block_until_ready(obj)

    ref = reference_forward(K, H, L_Y, L_S, epsilon)
    assert jnp.allclose(obj, ref, rtol=1e-4, atol=1e-4), (obj, ref)

    print("KERNEL_OK")
</pallas_src>

<mosaic_0001>
module attributes {stable_mosaic.version = 11 : i64} {
  func.func @_gdopt_partial_kernel(%arg0: i32, %arg1: memref<32x32xf32, #tpu.memory_space<vmem>>, %arg2: memref<32x32xf32, #tpu.memory_space<vmem>>, %arg3: memref<32x32xf32, #tpu.memory_space<vmem>>, %arg4: memref<1x128xf32, #tpu.memory_space<vmem>>) attributes {dimension_semantics = [#tpu.dimension_semantics<parallel>], iteration_bounds = array<i64: 1>, scalar_prefetch = 0 : i64, scratch_operands = 0 : i64, tpu.core_type = #tpu.core_type<tc>, window_params = [{transform_indices = @transform_0, window_bounds = array<i64: 32, 32>}, {transform_indices = @transform_1, window_bounds = array<i64: 32, 32>}, {transform_indices = @transform_2, window_bounds = array<i64: 32, 32>}, {transform_indices = @transform_3, window_bounds = array<i64: 1, 128>}]} {
    %c0 = arith.constant 0 : index
    %c0_0 = arith.constant 0 : index
    %0 = vector.load %arg1[%c0, %c0_0] : memref<32x32xf32, #tpu.memory_space<vmem>>, vector<32x32xf32>
    %c0_1 = arith.constant 0 : index
    %c0_2 = arith.constant 0 : index
    %1 = vector.load %arg2[%c0_1, %c0_2] : memref<32x32xf32, #tpu.memory_space<vmem>>, vector<32x32xf32>
    %c0_3 = arith.constant 0 : index
    %c0_4 = arith.constant 0 : index
    %2 = vector.load %arg3[%c0_3, %c0_4] : memref<32x32xf32, #tpu.memory_space<vmem>>, vector<32x32xf32>
    %cst = arith.constant dense<0.000000e+00> : vector<32xf32>
    %3 = vector.multi_reduction <add>, %0, %cst [1] : vector<32x32xf32> to vector<32xf32>
    %4 = vector.shape_cast %3 : vector<32xf32> to vector<32x1xf32>
    %cst_5 = arith.constant dense<0.000000e+00> : vector<32xf32>
    %5 = vector.multi_reduction <add>, %1, %cst_5 [1] : vector<32x32xf32> to vector<32xf32>
    %6 = vector.shape_cast %5 : vector<32xf32> to vector<32x1xf32>
    %cst_6 = arith.constant dense<0.000000e+00> : vector<32xf32>
    %7 = vector.multi_reduction <add>, %2, %cst_6 [1] : vector<32x32xf32> to vector<32xf32>
    %8 = vector.shape_cast %7 : vector<32xf32> to vector<32x1xf32>
    %9 = arith.mulf %0, %1 : vector<32x32xf32>
    %10 = vector.shape_cast %9 : vector<32x32xf32> to vector<1x32x32xf32>
    %cst_7 = arith.constant dense<0.000000e+00> : vector<1xf32>
    %11 = vector.multi_reduction <add>, %10, %cst_7 [1, 2] : vector<1x32x32xf32> to vector<1xf32>
    %12 = vector.shape_cast %11 : vector<1xf32> to vector<1x1x1xf32>
    %13 = vector.extract %12[0, 0, 0] : f32 from vector<1x1x1xf32>
    %14 = arith.mulf %0, %2 : vector<32x32xf32>
    %15 = vector.shape_cast %14 : vector<32x32xf32> to vector<1x32x32xf32>
    %cst_8 = arith.constant dense<0.000000e+00> : vector<1xf32>
    %16 = vector.multi_reduction <add>, %15, %cst_8 [1, 2] : vector<1x32x32xf32> to vector<1xf32>
    %17 = vector.shape_cast %16 : vector<1xf32> to vector<1x1x1xf32>
    %18 = vector.extract %17[0, 0, 0] : f32 from vector<1x1x1xf32>
    %19 = arith.mulf %4, %6 : vector<32x1xf32>
    %20 = vector.shape_cast %19 : vector<32x1xf32> to vector<1x32x1xf32>
    %cst_9 = arith.constant dense<0.000000e+00> : vector<1xf32>
    %21 = vector.multi_reduction <add>, %20, %cst_9 [1, 2] : vector<1x32x1xf32> to vector<1xf32>
    %22 = vector.shape_cast %21 : vector<1xf32> to vector<1x1x1xf32>
    %23 = vector.extract %22[0, 0, 0] : f32 from vector<1x1x1xf32>
    %24 = arith.mulf %4, %8 : vector<32x1xf32>
    %25 = vector.shape_cast %24 : vector<32x1xf32> to vector<1x32x1xf32>
    %cst_10 = arith.constant dense<0.000000e+00> : vector<1xf32>
    %26 = vector.multi_reduction <add>, %25, %cst_10 [1, 2] : vector<1x32x1xf32> to vector<1xf32>
    %27 = vector.shape_cast %26 : vector<1xf32> to vector<1x1x1xf32>
    %28 = vector.extract %27[0, 0, 0] : f32 from vector<1x1x1xf32>
    %29 = vector.shape_cast %4 : vector<32x1xf32> to vector<1x32x1xf32>
    %cst_11 = arith.constant dense<0.000000e+00> : vector<1xf32>
    %30 = vector.multi_reduction <add>, %29, %cst_11 [1, 2] : vector<1x32x1xf32> to vector<1xf32>
    %31 = vector.shape_cast %30 : vector<1xf32> to vector<1x1x1xf32>
    %32 = vector.extract %31[0, 0, 0] : f32 from vector<1x1x1xf32>
    %33 = vector.shape_cast %6 : vector<32x1xf32> to vector<1x32x1xf32>
    %cst_12 = arith.constant dense<0.000000e+00> : vector<1xf32>
    %34 = vector.multi_reduction <add>, %33, %cst_12 [1, 2] : vector<1x32x1xf32> to vector<1xf32>
    %35 = vector.shape_cast %34 : vector<1xf32> to vector<1x1x1xf32>
    %36 = vector.extract %35[0, 0, 0] : f32 from vector<1x1x1xf32>
    %37 = vector.shape_cast %8 : vector<32x1xf32> to vector<1x32x1xf32>
    %cst_13 = arith.constant dense<0.000000e+00> : vector<1xf32>
    %38 = vector.multi_reduction <add>, %37, %cst_13 [1, 2] : vector<1x32x1xf32> to vector<1xf32>
    %39 = vector.shape_cast %38 : vector<1xf32> to vector<1x1x1xf32>
    %40 = vector.extract %39[0, 0, 0] : f32 from vector<1x1x1xf32>
    %41 = tpu.iota {dimensions = array<i32: 1>} : vector<1x128xi32>
    %cst_14 = arith.constant 0.000000e+00 : f32
    %42 = vector.broadcast %cst_14 : f32 to vector<1x128xf32>
    %c0_i32 = arith.constant 0 : i32
    %43 = vector.broadcast %c0_i32 : i32 to vector<1x128xi32>
    %44 = arith.cmpi eq, %41, %43 : vector<1x128xi32>
    %45 = vector.broadcast %13 : f32 to vector<1x128xf32>
    %46 = arith.select %44, %45, %42 : vector<1x128xi1>, vector<1x128xf32>
    %c1_i32 = arith.constant 1 : i32
    %47 = vector.broadcast %c1_i32 : i32 to vector<1x128xi32>
    %48 = arith.cmpi eq, %41, %47 : vector<1x128xi32>
    %49 = vector.broadcast %18 : f32 to vector<1x128xf32>
    %50 = arith.select %48, %49, %46 : vector<1x128xi1>, vector<1x128xf32>
    %c2_i32 = arith.constant 2 : i32
    %51 = vector.broadcast %c2_i32 : i32 to vector<1x128xi32>
    %52 = arith.cmpi eq, %41, %51 : vector<1x128xi32>
    %53 = vector.broadcast %23 : f32 to vector<1x128xf32>
    %54 = arith.select %52, %53, %50 : vector<1x128xi1>, vector<1x128xf32>
    %c3_i32 = arith.constant 3 : i32
    %55 = vector.broadcast %c3_i32 : i32 to vector<1x128xi32>
    %56 = arith.cmpi eq, %41, %55 : vector<1x128xi32>
    %57 = vector.broadcast %28 : f32 to vector<1x128xf32>
    %58 = arith.select %56, %57, %54 : vector<1x128xi1>, vector<1x128xf32>
    %c4_i32 = arith.constant 4 : i32
    %59 = vector.broadcast %c4_i32 : i32 to vector<1x128xi32>
    %60 = arith.cmpi eq, %41, %59 : vector<1x128xi32>
    %61 = vector.broadcast %32 : f32 to vector<1x128xf32>
    %62 = arith.select %60, %61, %58 : vector<1x128xi1>, vector<1x128xf32>
    %c5_i32 = arith.constant 5 : i32
    %63 = vector.broadcast %c5_i32 : i32 to vector<1x128xi32>
    %64 = arith.cmpi eq, %41, %63 : vector<1x128xi32>
    %65 = vector.broadcast %36 : f32 to vector<1x128xf32>
    %66 = arith.select %64, %65, %62 : vector<1x128xi1>, vector<1x128xf32>
    %c6_i32 = arith.constant 6 : i32
    %67 = vector.broadcast %c6_i32 : i32 to vector<1x128xi32>
    %68 = arith.cmpi eq, %41, %67 : vector<1x128xi32>
    %69 = vector.broadcast %40 : f32 to vector<1x128xf32>
    %70 = arith.select %68, %69, %66 : vector<1x128xi1>, vector<1x128xf32>
    %c0_15 = arith.constant 0 : index
    %c0_16 = arith.constant 0 : index
    %71 = vector.load %arg4[%c0_15, %c0_16] : memref<1x128xf32, #tpu.memory_space<vmem>>, vector<1x128xf32>
    tpu.vector_store %arg4[%c0_15, %c0_16], %70 {strides = array<i32>} : memref<1x128xf32, #tpu.memory_space<vmem>>, vector<1x128xf32>,
    return
  }
  func.func @transform_0(%arg0: i32) -> (i32, i32) {
    %c0_i32 = arith.constant 0 : i32
    %c0_i32_0 = arith.constant 0 : i32
    return %arg0, %c0_i32 : i32, i32
  }
  func.func @transform_1(%arg0: i32) -> (i32, i32) {
    %c0_i32 = arith.constant 0 : i32
    %c0_i32_0 = arith.constant 0 : i32
    return %arg0, %c0_i32 : i32, i32
  }
  func.func @transform_2(%arg0: i32) -> (i32, i32) {
    %c0_i32 = arith.constant 0 : i32
    %c0_i32_0 = arith.constant 0 : i32
    return %arg0, %c0_i32 : i32, i32
  }
  func.func @transform_3(%arg0: i32) -> (i32, i32) {
    %c0_i32 = arith.constant 0 : i32
    %c0_i32_0 = arith.constant 0 : i32
    return %arg0, %c0_i32 : i32, i32
  }
}

</mosaic_0001>

<bundles_post_ra>
// kernel: gdopt_forward.1
= control target key start
LH: loop header
LB: loop body
LE: loop exit
PB: predicated region body
PF: predicated region fallthrough
CT: control target
= control target key end

     0   :  { %8 = vsyncpa [#allocation3], 0  ;;  %s472_s0 = inlined_call_operand.hbm [shape: f32[32,32], index: 0, kind: input, shape index: {}]   ;;  %s473_s1 = inlined_call_operand.hbm [shape: f32[32,32], index: 1, kind: input, shape index: {}]   ;;  %s474_s2 = inlined_call_operand.hbm [shape: f32[32,32], index: 2, kind: input, shape index: {}]   ;;  %s475_s3 = inlined_call_operand.vmem [shape: f32[1,128], index: 3, kind: output, shape index: {}]  }
   0x1   :  { %9 = vsyncpa [#allocation5], 0  ;;  %s352_s12 = smov [#allocation4]   ;;  %s353_s14 = smov [#allocation2]  }
   0x2   :  { %s27_s13 = sshll.u32 %s352_s12, 4  ;;  %s15_s15 = sshll.u32 %s353_s14, 4  ;;  %s28_s13 = int_to_ptr.vmem [resolvable:$true] %s27_s13  ;;  %s377_s15 = int_to_ptr.vmem [resolvable:$true] %s15_s15 }
   0x3   :  { %s282_s18 = scalar_lea.hbm %s473_s1, 512 }
   0x4   :  { %p283_p0 = scmp.ne.s32.totalorder %s473_s1, %s282_s18  ;;  %p286_p1 = scmp.lt.u32.totalorder %s282_s18, %s473_s1 }
   0x6   :  { %p288_p2 = pnand %p286_p1, %p283_p0 }
   0x8   :  { %291 = shalt.err (!%p288_p2)
}
   0x9   :  { %s292_s23 = scalar_lea.vmem %s28_s13, 512  ;;  %p297_p4 = scmp.lt.s32.totalorder %s28_s13, %s28_s13 }
   0xa   :  { %p293_p3 = scmp.ne.s32.totalorder %s28_s13, %s292_s23  ;;  %p298_p5 = scmp.lt.s32.totalorder %s292_s23, %s292_s23 }
   0xc   :  { %p299_p6 = por %p298_p5, %p297_p4 }
   0xe   :  { %p300_p7 = pnand %p299_p6, %p293_p3 }
  0x10   :  { %303 = shalt.err (!%p300_p7)
}
  0x11   :  { %s354_s24 = smov 128   ;;  %s355_s25 = smov 8  }
  0x12   :  { %33 = dma.hbm_to_vmem [thread:$0]  %s473_s1, 512, %s28_s13, [#allocation5], %s354_s24, %s354_s24, %s355_s25  }
  0x13   :  { %s304_s30 = scalar_lea.hbm %s472_s0, 512 }
  0x14   :  { %p305_p8 = scmp.ne.s32.totalorder %s472_s0, %s304_s30  ;;  %p308_p9 = scmp.lt.u32.totalorder %s304_s30, %s472_s0 }
  0x16   :  { %p310_p10 = pnand %p308_p9, %p305_p8 }
  0x18   :  { %313 = shalt.err (!%p310_p10)
}
  0x19   :  { %s314_s8 = scalar_lea.vmem %s377_s15, 512  ;;  %p319_p12 = scmp.lt.s32.totalorder %s377_s15, %s377_s15 }
  0x1a   :  { %p315_p11 = scmp.ne.s32.totalorder %s377_s15, %s314_s8  ;;  %p320_p13 = scmp.lt.s32.totalorder %s314_s8, %s314_s8 }
  0x1c   :  { %p321_p0 = por %p320_p13, %p319_p12 }
  0x1e   :  { %p322_p1 = pnand %p321_p0, %p315_p11 }
  0x20   :  { %325 = shalt.err (!%p322_p1)
}
  0x21   :  { %21 = dma.hbm_to_vmem [thread:$0]  %s472_s0, 512, %s377_s15, [#allocation3], %s354_s24, %s354_s24, %s355_s25  }
  0x22   :  { %s356_s10 = smov [#allocation6]   ;;  %s326_s14 = scalar_lea.hbm %s474_s2, 512 }
  0x23   :  { %s39_s11 = sshll.u32 %s356_s10, 4  ;;  %p327_p2 = scmp.ne.s32.totalorder %s474_s2, %s326_s14  ;;  %s40_s11 = int_to_ptr.vmem [resolvable:$true] %s39_s11 }
  0x24   :  { %p330_p3 = scmp.lt.u32.totalorder %s326_s14, %s474_s2 }
  0x26   :  { %p332_p4 = pnand %p330_p3, %p327_p2 }
  0x28   :  { %335 = shalt.err (!%p332_p4)
}
  0x29   :  { %s336_s20 = scalar_lea.vmem %s40_s11, 512  ;;  %p341_p6 = scmp.lt.s32.totalorder %s40_s11, %s40_s11 }
  0x2a   :  { %p337_p5 = scmp.ne.s32.totalorder %s40_s11, %s336_s20  ;;  %p342_p7 = scmp.lt.s32.totalorder %s336_s20, %s336_s20 }
  0x2c   :  { %p343_p8 = por %p342_p7, %p341_p6 }
  0x2e   :  { %p344_p9 = pnand %p343_p8, %p337_p5 }
  0x30   :  { %347 = shalt.err (!%p344_p9)
}
  0x31   :  { %45 = dma.hbm_to_vmem [thread:$0]  %s474_s2, 512, %s40_s11, [#allocation5], %s354_s24, %s354_s24, %s355_s25  }
  0x32   :  { %348 = dma.done.wait [#allocation3], 512  }
  0x33   :  { %349 = vsyncadd [#allocation3], 4294966784 }
  0x34   :  { %350 = dma.done.wait [#allocation5], 1024  }
  0x35   :  { %351 = vsyncadd [#allocation5], 4294966272  ;;  %vm67_vm0 = vcmask 261120   ;;  %v59_v0 = vld [vmem:[#allocation4] sm:$0xff]  ;;  %v60_v2 = vld [vmem:[#allocation4 + $0x8] sm:$0xff]  ;;  %vm148_vm1 = vcmask 7168  }
  0x36   :  { %v55_v1 = vld [vmem:[#allocation2] sm:$0xff]  ;;  %v80_v3 = vsel %vm67_vm0, %v59_v0, 0.0  ;;  %v56_v5 = vld [vmem:[#allocation2 + $0x8] sm:$0xff]  ;;  %v83_v6 = vsel %vm67_vm0, %v60_v2, 0.0  ;;  %v61_v12 = vld [vmem:[#allocation4 + $0x10] sm:$0xff] }
  0x37   :  { %v68_v4 = vsel %vm67_vm0, %v55_v1, 0.0  ;;  %81 = vadd.xlane.f32.xlu1 %v80_v3  ;;  %v71_v7 = vsel %vm67_vm0, %v56_v5, 0.0  ;;  %v64_v8 = vld [vmem:[#allocation6 + $0x8] sm:$0xff]  ;;  %v63_v9 = vld [vmem:[#allocation6] sm:$0xff]  ;;  %v57_v13 = vld [vmem:[#allocation2 + $0x10] sm:$0xff]  ;;  %v86_v14 = vsel %vm67_vm0, %v61_v12, 0.0  ;;  %v104_v18 = vmul.f32 %v59_v0, %v55_v1 }
  0x38   :  { %69 = vadd.xlane.f32.xlu0 %v68_v4  ;;  %v95_v10 = vsel %vm67_vm0, %v64_v8, 0.0  ;;  %v92_v11 = vsel %vm67_vm0, %v63_v9, 0.0  ;;  %v74_v15 = vsel %vm67_vm0, %v57_v13, 0.0  ;;  %v58_v16 = vld [vmem:[#allocation2 + $0x18] sm:$0xff]  ;;  %v65_v17 = vld [vmem:[#allocation6 + $0x10] sm:$0xff]  ;;  %v105_v19 = vmul.f32 %v60_v2, %v56_v5 }
  0x39   :  { %v77_v20 = vsel %vm67_vm0, %v58_v16, 0.0  ;;  %v98_v21 = vsel %vm67_vm0, %v65_v17, 0.0  ;;  %v125_v22 = vmul.f32 %v64_v8, %v56_v5  ;;  %v124_v23 = vmul.f32 %v63_v9, %v55_v1  ;;  %v66_v24 = vld [vmem:[#allocation6 + $0x18] sm:$0xff] }
  0x3a   :  { %v62_v25 = vld [vmem:[#allocation4 + $0x18] sm:$0xff]  ;;  %v108_v26 = vsel %vm67_vm0, %v104_v18, 0.0  ;;  %v109_v27 = vsel %vm67_vm0, %v105_v19, 0.0  ;;  %v106_v28 = vmul.f32 %v61_v12, %v57_v13  ;;  %v101_v29 = vsel %vm67_vm0, %v66_v24, 0.0 }
  0x3b   :  { %84 = vadd.xlane.f32.xlu1 %v83_v6  ;;  %v89_v30 = vsel %vm67_vm0, %v62_v25, 0.0  ;;  %v129_v31 = vsel %vm67_vm0, %v125_v22, 0.0  ;;  %v128_v32 = vsel %vm67_vm0, %v124_v23, 0.0  ;;  %v126_v33 = vmul.f32 %v65_v17, %v57_v13 }
  0x3c   :  { %72 = vadd.xlane.f32.xlu0 %v71_v7  ;;  %v107_v34 = vmul.f32 %v62_v25, %v58_v16  ;;  %v127_v35 = vmul.f32 %v66_v24, %v58_v16  ;;  %v110_v36 = vadd.f32 %v109_v27, %v108_v26  ;;  %v111_v37 = vsel %vm67_vm0, %v106_v28, 0.0 }
  0x3d   :  { %v130_v38 = vadd.f32 %v129_v31, %v128_v32  ;;  %v131_v40 = vsel %vm67_vm0, %v126_v33, 0.0 }
  0x3e   :  { %v112_v39 = vadd.f32 %v111_v37, %v110_v36  ;;  %v113_v41 = vsel %vm67_vm0, %v107_v34, 0.0  ;;  %v133_v44 = vsel %vm67_vm0, %v127_v35, 0.0 }
  0x3f   :  { %96 = vadd.xlane.f32.xlu1 %v95_v10  ;;  %v132_v42 = vadd.f32 %v131_v40, %v130_v38 }
  0x40   :  { %93 = vadd.xlane.f32.xlu0 %v92_v11  ;;  %v114_v43 = vadd.f32 %v113_v41, %v112_v39 }
  0x41   :  { %v134_v45 = vadd.f32 %v133_v44, %v132_v42 }
  0x43   :  { %87 = vadd.xlane.f32.xlu1 %v86_v14 }
  0x44   :  { %75 = vadd.xlane.f32.xlu0 %v74_v15 }
  0x47   :  { %78 = vadd.xlane.f32.xlu1 %v77_v20 }
  0x48   :  { %99 = vadd.xlane.f32.xlu0 %v98_v21 }
  0x4b   :  { %102 = vadd.xlane.f32.xlu1 %v101_v29 }
  0x4c   :  { %90 = vadd.xlane.f32.xlu0 %v89_v30 }
  0x4f   :  { %135 = vadd.xlane.f32.xlu1 %v134_v45 }
  0x50   :  { %115 = vadd.xlane.f32.xlu0 %v114_v43 }
  0xc4   :  { %v82_v46 = vpop.xlane.xlu1 %81 }
  0xc5   :  { %v70_v47 = vpop.xlane.xlu0 %69  ;;  %v201_v20 = vsel %vm148_vm1, %v82_v46, 0.0 }
  0xc6   :  { %v185_v56 = vsel %vm148_vm1, %v70_v47, 0.0  ;;  %v144_v61 = vmul.f32 %v82_v46, %v70_v47 }
  0xc8   :  { %v85_v48 = vpop.xlane.xlu1 %84  ;;  %v149_v8 = vsel %vm148_vm1, %v144_v61, 0.0 }
  0xc9   :  { %v73_v49 = vpop.xlane.xlu0 %72  ;;  %v202_v11 = vsel %vm148_vm1, %v85_v48, 0.0 }
  0xca   :  { %v186_v52 = vsel %vm148_vm1, %v73_v49, 0.0  ;;  %v145_v53 = vmul.f32 %v85_v48, %v73_v49  ;;  %v203_v27 = vadd.f32 %v202_v11, %v201_v20 }
  0xcb   :  { %v187_v60 = vadd.f32 %v186_v52, %v185_v56 }
  0xcc   :  { %v97_v50 = vpop.xlane.xlu1 %96  ;;  %v150_v63 = vsel %vm148_vm1, %v145_v53, 0.0 }
  0xcd   :  { %v94_v51 = vpop.xlane.xlu0 %93  ;;  %v166_v57 = vmul.f32 %v97_v50, %v73_v49  ;;  %v151_v15 = vadd.f32 %v150_v63, %v149_v8  ;;  %v218_v16 = vsel %vm148_vm1, %v97_v50, 0.0 }
  0xce   :  { %v165_v58 = vmul.f32 %v94_v51, %v70_v47  ;;  %v217_v17 = vsel %vm148_vm1, %v94_v51, 0.0 }
  0xcf   :  { %v170_v3 = vsel %vm148_vm1, %v166_v57, 0.0  ;;  %v219_v28 = vadd.f32 %v218_v16, %v217_v17 }
  0xd0   :  { %v88_v54 = vpop.xlane.xlu1 %87  ;;  %v169_v4 = vsel %vm148_vm1, %v165_v58, 0.0 }
  0xd1   :  { %v76_v55 = vpop.xlane.xlu0 %75  ;;  %v171_v12 = vadd.f32 %v170_v3, %v169_v4  ;;  %v204_v23 = vsel %vm148_vm1, %v88_v54, 0.0 }
  0xd2   :  { %v188_v59 = vsel %vm148_vm1, %v76_v55, 0.0  ;;  %v146_v62 = vmul.f32 %v88_v54, %v76_v55  ;;  %v205_v33 = vadd.f32 %v204_v23, %v203_v27 }
  0xd3   :  { %v189_v2 = vadd.f32 %v188_v59, %v187_v60 }
  0xd4   :  { %v79_v0 = vpop.xlane.xlu1 %78  ;;  %v152_v10 = vsel %vm148_vm1, %v146_v62, 0.0 }
  0xd5   :  { %v100_v1 = vpop.xlane.xlu0 %99  ;;  %v190_v6 = vsel %vm148_vm1, %v79_v0, 0.0  ;;  %v153_v22 = vadd.f32 %v152_v10, %v151_v15 }
  0xd6   :  { %v167_v5 = vmul.f32 %v100_v1, %v76_v55  ;;  %v191_v7 = vadd.f32 %v190_v6, %v189_v2  ;;  %v220_v24 = vsel %vm148_vm1, %v100_v1, 0.0 }
  0xd7   :  { %v221_v34 = vadd.f32 %v220_v24, %v219_v28 }
  0xd8   :  { %v172_v9 = vsel %vm148_vm1, %v167_v5, 0.0  ;;  %v103_v13 = vpop.xlane.xlu1 %102  ;;  %192 = vadd.xlane.f32.xlu0 %v191_v7 }
  0xd9   :  { %v91_v14 = vpop.xlane.xlu0 %90  ;;  %v168_v18 = vmul.f32 %v103_v13, %v79_v0  ;;  %v173_v21 = vadd.f32 %v172_v9, %v171_v12  ;;  %v222_v31 = vsel %vm148_vm1, %v103_v13, 0.0 }
  0xda   :  { %v147_v19 = vmul.f32 %v91_v14, %v79_v0  ;;  %v206_v32 = vsel %vm148_vm1, %v91_v14, 0.0  ;;  %v223_v38 = vadd.f32 %v222_v31, %v221_v34 }
  0xdb   :  { %v174_v25 = vsel %vm148_vm1, %v168_v18, 0.0  ;;  %v207_v39 = vadd.f32 %v206_v32, %v205_v33 }
  0xdc   :  { %v154_v26 = vsel %vm148_vm1, %v147_v19, 0.0  ;;  %v175_v29 = vadd.f32 %v174_v25, %v173_v21  ;;  %v136_v37 = vpop.xlane.xlu1 %135 }
  0xdd   :  { %v155_v30 = vadd.f32 %v154_v26, %v153_v22  ;;  %v116_v35 = vpop.xlane.xlu0 %115  ;;  %v137_v40 = vrot.slane %v136_v37, 4  ;;  %v233_v22 = vlaneseq }
  0xde   :  { %176 = vadd.xlane.f32.xlu1 %v175_v29  ;;  %v117_v36 = vrot.slane %v116_v35, 4 }
  0xdf   :  { %156 = vadd.xlane.f32.xlu0 %v155_v30  ;;  %v138_v42 = vadd.f32 %v137_v40, %v136_v37  ;;  %v234_v23 = vand.u32 127, %v233_v22 }
  0xe0   :  { %v118_v41 = vadd.f32 %v117_v36, %v116_v35 }
  0xe1   :  { %v139_v44 = vrot.slane %v138_v42, 2  ;;  %vm235_vm2 = vcmp.eq.s32.totalorder %v234_v23, 0  ;;  %vm238_vm3 = vcmp.eq.s32.totalorder %v234_v23, 1  ;;  %vm241_vm4 = vcmp.eq.s32.totalorder %v234_v23, 2 }
  0xe2   :  { %208 = vadd.xlane.f32.xlu1 %v207_v39  ;;  %v119_v43 = vrot.slane %v118_v41, 2  ;;  %vm244_vm5 = vcmp.eq.s32.totalorder %v234_v23, 3  ;;  %vm247_vm6 = vcmp.eq.s32.totalorder %v234_v23, 4  ;;  %vm250_vm7 = vcmp.eq.s32.totalorder %v234_v23, 5 }
  0xe3   :  { %224 = vadd.xlane.f32.xlu0 %v223_v38  ;;  %v140_v46 = vadd.f32 %v139_v44, %v138_v42  ;;  %vm253_vm8 = vcmp.eq.s32.totalorder %v234_v23, 6 }
  0xe4   :  { %v120_v45 = vadd.f32 %v119_v43, %v118_v41 }
  0xe5   :  { %v141_v48 = vrot.slane %v140_v46, 1 }
  0xe6   :  { %v121_v47 = vrot.slane %v120_v45, 1 }
  0xe7   :  { %v142_v50 = vadd.f32 %v141_v48, %v140_v46 }
  0xe8   :  { %v122_v49 = vadd.f32 %v121_v47, %v120_v45 }
  0xea   :  { %263 = vpush %v122_v49 }
  0xeb   :  { %265 = vpush %v142_v50 }
 0x11b   :  { %s264_s2 = spop %263 }
 0x11c   :  { %v236_v24 = vstv %s264_s2  ;;  %s266_s21 = spop %265 }
 0x11d   :  { %v237_v25 = vsel %vm235_vm2, %v236_v24, 0.0  ;;  %v239_v26 = vstv %s266_s21 }
 0x11e   :  { %v240_v27 = vsel %vm238_vm3, %v239_v26, %v237_v25 }
 0x165   :  { %v193_v51 = vpop.xlane.xlu0 %192 }
 0x166   :  { %v194_v52 = vrot.slane %v193_v51, 4 }
 0x168   :  { %v195_v53 = vadd.f32 %v194_v52, %v193_v51 }
 0x16a   :  { %v196_v54 = vrot.slane %v195_v53, 2 }
 0x16b   :  { %v177_v55 = vpop.xlane.xlu1 %176 }
 0x16c   :  { %v157_v56 = vpop.xlane.xlu0 %156  ;;  %v178_v57 = vrot.slane %v177_v55, 4  ;;  %v197_v63 = vadd.f32 %v196_v54, %v195_v53 }
 0x16d   :  { %v158_v58 = vrot.slane %v157_v56, 4 }
 0x16e   :  { %v179_v59 = vadd.f32 %v178_v57, %v177_v55  ;;  %v198_v8 = vrot.slane %v197_v63, 1 }
 0x16f   :  { %v159_v60 = vadd.f32 %v158_v58, %v157_v56  ;;  %v209_v61 = vpop.xlane.xlu1 %208 }
 0x170   :  { %v225_v62 = vpop.xlane.xlu0 %224  ;;  %v180_v0 = vrot.slane %v179_v59, 2  ;;  %v210_v2 = vrot.slane %v209_v61, 4  ;;  %v199_v17 = vadd.f32 %v198_v8, %v197_v63 }
 0x171   :  { %v160_v1 = vrot.slane %v159_v60, 2  ;;  %v226_v3 = vrot.slane %v225_v62, 4 }
 0x172   :  { %v211_v4 = vadd.f32 %v210_v2, %v209_v61  ;;  %v181_v7 = vadd.f32 %v180_v0, %v179_v59 }
 0x173   :  { %v227_v5 = vadd.f32 %v226_v3, %v225_v62  ;;  %v161_v6 = vadd.f32 %v160_v1, %v159_v60 }
 0x174   :  { %v212_v9 = vrot.slane %v211_v4, 2  ;;  %v182_v12 = vrot.slane %v181_v7, 1 }
 0x175   :  { %v228_v10 = vrot.slane %v227_v5, 2  ;;  %v162_v11 = vrot.slane %v161_v6, 1 }
 0x176   :  { %v213_v13 = vadd.f32 %v212_v9, %v211_v4  ;;  %v183_v16 = vadd.f32 %v182_v12, %v181_v7 }
 0x177   :  { %v229_v14 = vadd.f32 %v228_v10, %v227_v5  ;;  %v163_v15 = vadd.f32 %v162_v11, %v161_v6 }
 0x178   :  { %v214_v18 = vrot.slane %v213_v13, 1 }
 0x179   :  { %267 = vpush %v163_v15  ;;  %v230_v19 = vrot.slane %v229_v14, 1 }
 0x17a   :  { %269 = vpush %v183_v16  ;;  %v215_v20 = vadd.f32 %v214_v18, %v213_v13 }
 0x17b   :  { %271 = vpush %v199_v17  ;;  %v231_v21 = vadd.f32 %v230_v19, %v229_v14 }
 0x17c   :  { %273 = vpush %v215_v20 }
 0x17d   :  { %275 = vpush %v231_v21 }
 0x1aa   :  { %s268_s22 = spop %267 }
 0x1ab   :  { %v242_v28 = vstv %s268_s22  ;;  %s270_s23 = spop %269 }
 0x1ac   :  { %v243_v29 = vsel %vm241_vm4, %v242_v28, %v240_v27  ;;  %v245_v30 = vstv %s270_s23  ;;  %s272_s24 = spop %271 }
 0x1ad   :  { %v246_v31 = vsel %vm244_vm5, %v245_v30, %v243_v29  ;;  %v248_v32 = vstv %s272_s24  ;;  %s274_s25 = spop %273 }
 0x1ae   :  { %v249_v33 = vsel %vm247_vm6, %v248_v32, %v246_v31  ;;  %v251_v34 = vstv %s274_s25  ;;  %s276_s26 = spop %275 }
 0x1af   :  { %v252_v35 = vsel %vm250_vm7, %v251_v34, %v249_v33  ;;  %v254_v36 = vstv %s276_s26 }
 0x1b0   :  { %v255_v37 = vsel %vm253_vm8, %v254_v36, %v252_v35 }
 0x1b1   :  { %256 = vst [vmem:[%s475_s3] sm:$0x1] %v255_v37 }
 0x1b2   :  { %261 = vsyncpa [#allocation3], 1 }
 0x1b3   :  { %262 = vsyncpa [#allocation5], 1 }

</bundles_post_ra>
